<compile_context>
chip_gen: v7x
topology: tpu7x:2x2x1
jax: 0.10.0
libtpu: 0.0.40
codegen_flags: <defaults>
</compile_context>

<pallas_src>
import functools

import jax
import jax.numpy as jnp
from jax.experimental import pallas as pl
from jax.experimental.pallas import tpu as pltpu

ALPHA = 0.05
LANE = 128
SUBLANE = 8
TILE_ROWS = 1024    # (1024, 128) f32 tile = 512 KiB; 2 inputs x 2 bufs = 2 MiB
NCORES = 2          # leading "parallel" grid axis (megacore split on v7x)


def _bce_blur_kernel(n_valid_ref, pred_ref, true_ref, out_ref, *,
                     inv_alpha, tile_rows, steps_per_core):
    c = pl.program_id(0)
    j = pl.program_id(1)

    # Output block is resident across the 'arbitrary' axis -> per-core
    # vector accumulator.
    @pl.when(j == 0)
    def _():
        out_ref[...] = jnp.zeros_like(out_ref)

    x = pred_ref[...].astype(jnp.float32)
    y = true_ref[...].astype(jnp.float32)

    # One shared transcendental feeds both the stable BCE and the sigmoid:
    #   e   = exp(-|x|)
    #   sp  = softplus(x) = max(x, 0) + log1p(e)
    #   bce = sp - x*y                      (BCEWithLogits, reduction='none')
    #   p   = sigmoid(x) = exp(x - sp)      (exact; no vrcp/Newton chain)
    e = jnp.exp(-jnp.abs(x))
    sp = jnp.maximum(x, 0.0) + jnp.log1p(e)
    bce = sp - x * y
    p = jnp.exp(x - sp)

    dx = p - y
    # (dx - 1) / (alpha + 1e-4)  ==  dx*inv_alpha - inv_alpha
    alpha_factor = 1.0 - jnp.exp(dx * inv_alpha - inv_alpha)
    loss = bce * alpha_factor

    n_valid = n_valid_ref[0]
    block_elems = tile_rows * LANE
    # NOTE: int32 index math overflows for tensors with >= 2^31 elements.
    base = (c * steps_per_core + j) * block_elems
    needs_mask = base + block_elems > n_valid

    # Fast path: fully-valid tile, no mask machinery at all.
    @pl.when(jnp.logical_not(needs_mask))
    def _():
        out_ref[...] += jnp.sum(
            loss.reshape(tile_rows // SUBLANE, SUBLANE, LANE), axis=0)

    # Slow path: the one ragged tile (and any fully-OOB duplicate tail tiles).
    # where-select is NaN/inf-safe against garbage in the OOB region.
    @pl.when(needs_mask)
    def _():
        rows = jax.lax.broadcasted_iota(jnp.int32, (tile_rows, LANE), 0)
        lanes = jax.lax.broadcasted_iota(jnp.int32, (tile_rows, LANE), 1)
        gidx = base + rows * LANE + lanes
        masked = jnp.where(gidx < n_valid, loss, 0.0)
        out_ref[...] += jnp.sum(
            masked.reshape(tile_rows // SUBLANE, SUBLANE, LANE), axis=0)


def bce_blur_with_logits_loss(pred, true, alpha=ALPHA):
    """pred, true: arbitrary (identical) shapes, e.g. NCHW [B, C, H, W]."""
    assert pred.shape == true.shape
    n_valid = pred.size

    flat_p = jnp.ravel(pred)     # layout-preserving, effectively free
    flat_t = jnp.ravel(true)     # native dtype; cast to f32 happens in-kernel

    # Tiny pad only to an (8, 128) row-tile multiple (<= 1023 elements) so the
    # 2-D reshape below is legal; never pad to a full grid-block multiple.
    pad_unit = SUBLANE * LANE
    n_pad = (-n_valid) % pad_unit
    if n_pad:
        flat_p = jnp.pad(flat_p, (0, n_pad))
        flat_t = jnp.pad(flat_t, (0, n_pad))

    M = flat_p.size // LANE                       # rows, multiple of 8
    tile_rows = min(TILE_ROWS, M)                 # multiple of 8
    total_blocks = pl.cdiv(M, tile_rows)
    steps_per_core = pl.cdiv(total_blocks, NCORES)
    last_block = total_blocks - 1

    p2 = flat_p.reshape(M, LANE)
    t2 = flat_t.reshape(M, LANE)

    kernel = functools.partial(
        _bce_blur_kernel,
        inv_alpha=float(1.0 / (alpha + 1e-4)),
        tile_rows=tile_rows,
        steps_per_core=steps_per_core,
    )

    # Clamp the block index so duplicate tail iterations (when total_blocks is
    # not a multiple of NCORES) issue in-bounds DMAs; their contribution is
    # zeroed in-kernel because gidx is computed from the *logical* block index.
    def in_map(c, j, n_valid_ref):
        return (jnp.minimum(c * steps_per_core + j, last_block), 0)

    n_valid_arr = jnp.asarray([n_valid], dtype=jnp.int32)

    partials = pl.pallas_call(
        kernel,
        out_shape=jax.ShapeDtypeStruct((NCORES * SUBLANE, LANE), jnp.float32),
        grid_spec=pltpu.PrefetchScalarGridSpec(
            num_scalar_prefetch=1,
            grid=(NCORES, steps_per_core),
            in_specs=[
                pl.BlockSpec((tile_rows, LANE), in_map),
                pl.BlockSpec((tile_rows, LANE), in_map),
            ],
            out_specs=pl.BlockSpec((SUBLANE, LANE), lambda c, j, nv: (c, 0)),
        ),
        compiler_params=pltpu.CompilerParams(
            # TODO(synk): on v7x verify via xprof that the leading axis lands
            # on both TensorCores; if not, switch it to pltpu.CORE_PARALLEL.
            dimension_semantics=("parallel", "arbitrary"),
            vmem_limit_bytes=32 * 1024 * 1024,
        ),
    )(n_valid_arr, p2, t2)

    # Final tiny reduction (2*8*128 elements) + mean, done in the wrapper.
    return jnp.sum(partials) / jnp.float32(n_valid)


def _reference(pred, true, alpha=ALPHA):
    x = pred.astype(jnp.float32)
    y = true.astype(jnp.float32)
    loss = jnp.maximum(x, 0.0) - x * y + jnp.log1p(jnp.exp(-jnp.abs(x)))
    p = jax.nn.sigmoid(x)
    dx = p - y
    loss = loss * (1.0 - jnp.exp((dx - 1.0) / (alpha + 1e-4)))
    return jnp.mean(loss)


if __name__ == "__main__":
    key = jax.random.PRNGKey(0)
    k_pred, k_true = jax.random.split(key)

    # Shapes consistent with a detection head output: NCHW [2, 4, 16, 16]
    pred = jax.random.normal(k_pred, (2, 4, 16, 16), dtype=jnp.float32)
    true = (jax.random.uniform(k_true, (2, 4, 16, 16)) > 0.5).astype(jnp.float32)

    out = bce_blur_with_logits_loss(pred, true)
    out = jax.block_until_ready(out)

    ref = _reference(pred, true)
    assert jnp.allclose(out, ref, atol=1e-5, rtol=1e-5), (out, ref)
    print("KERNEL_OK")
</pallas_src>

<mosaic_0001>
module attributes {stable_mosaic.version = 11 : i64} {
  func.func @_bce_blur_kernel(%arg0: i32, %arg1: i32, %arg2: memref<1xi32, #tpu.memory_space<smem>>, %arg3: memref<16x128xf32, #tpu.memory_space<vmem>>, %arg4: memref<16x128xf32, #tpu.memory_space<vmem>>, %arg5: memref<8x128xf32, #tpu.memory_space<vmem>>) attributes {dimension_semantics = [#tpu.dimension_semantics<parallel>, #tpu.dimension_semantics<arbitrary>], iteration_bounds = array<i64: 2, 1>, scalar_prefetch = 1 : i64, scratch_operands = 0 : i64, tpu.core_type = #tpu.core_type<tc>, window_params = [{transform_indices = @transform_0, window_bounds = array<i64: 16, 128>}, {transform_indices = @transform_1, window_bounds = array<i64: 16, 128>}, {transform_indices = @transform_2, window_bounds = array<i64: 8, 128>}]} {
    %c0_i32 = arith.constant 0 : i32
    %0 = arith.cmpi eq, %arg1, %c0_i32 : i32
    %1 = arith.extui %0 : i1 to i32
    %c0_i32_0 = arith.constant 0 : i32
    %2 = arith.cmpi ne, %1, %c0_i32_0 : i32
    scf.if %2 {
      %cst_12 = arith.constant 0.000000e+00 : f32
      %37 = vector.broadcast %cst_12 : f32 to vector<8x128xf32>
      %c0_13 = arith.constant 0 : index
      %c0_14 = arith.constant 0 : index
      %38 = vector.load %arg5[%c0_13, %c0_14] : memref<8x128xf32, #tpu.memory_space<vmem>>, vector<8x128xf32>
      tpu.vector_store %arg5[%c0_13, %c0_14], %37 {strides = array<i32>} : memref<8x128xf32, #tpu.memory_space<vmem>>, vector<8x128xf32>,
    } else {
    }
    %c0 = arith.constant 0 : index
    %c0_1 = arith.constant 0 : index
    %3 = vector.load %arg3[%c0, %c0_1] : memref<16x128xf32, #tpu.memory_space<vmem>>, vector<16x128xf32>
    %c0_2 = arith.constant 0 : index
    %c0_3 = arith.constant 0 : index
    %4 = vector.load %arg4[%c0_2, %c0_3] : memref<16x128xf32, #tpu.memory_space<vmem>>, vector<16x128xf32>
    %5 = math.absf %3 : vector<16x128xf32>
    %cst = arith.constant 0.000000e+00 : f32
    %6 = vector.broadcast %cst : f32 to vector<16x128xf32>
    %7 = arith.subf %6, %5 : vector<16x128xf32>
    %8 = math.exp %7 : vector<16x128xf32>
    %cst_4 = arith.constant 0.000000e+00 : f32
    %9 = vector.broadcast %cst_4 : f32 to vector<16x128xf32>
    %10 = arith.maximumf %3, %9 : vector<16x128xf32>
    %11 = math.log1p %8 : vector<16x128xf32>
    %12 = arith.addf %10, %11 : vector<16x128xf32>
    %13 = arith.mulf %3, %4 : vector<16x128xf32>
    %14 = arith.subf %12, %13 : vector<16x128xf32>
    %15 = arith.subf %3, %12 : vector<16x128xf32>
    %16 = math.exp %15 : vector<16x128xf32>
    %17 = arith.subf %16, %4 : vector<16x128xf32>
    %cst_5 = arith.constant 19.9600792 : f32
    %18 = vector.broadcast %cst_5 : f32 to vector<16x128xf32>
    %19 = arith.mulf %17, %18 : vector<16x128xf32>
    %cst_6 = arith.constant 19.9600792 : f32
    %20 = vector.broadcast %cst_6 : f32 to vector<16x128xf32>
    %21 = arith.subf %19, %20 : vector<16x128xf32>
    %22 = math.exp %21 : vector<16x128xf32>
    %cst_7 = arith.constant 1.000000e+00 : f32
    %23 = vector.broadcast %cst_7 : f32 to vector<16x128xf32>
    %24 = arith.subf %23, %22 : vector<16x128xf32>
    %25 = arith.mulf %14, %24 : vector<16x128xf32>
    %c0_8 = arith.constant 0 : index
    %26 = memref.load %arg2[%c0_8] : memref<1xi32, #tpu.memory_space<smem>>
    %c1_i32 = arith.constant 1 : i32
    %27 = arith.muli %arg0, %c1_i32 : i32
    %28 = arith.addi %27, %arg1 : i32
    %c2048_i32 = arith.constant 2048 : i32
    %29 = arith.muli %28, %c2048_i32 : i32
    %c2048_i32_9 = arith.constant 2048 : i32
    %30 = arith.addi %29, %c2048_i32_9 : i32
    %31 = arith.cmpi sgt, %30, %26 : i32
    %true = arith.constant true
    %32 = arith.xori %31, %true : i1
    %33 = arith.extui %32 : i1 to i32
    %c0_i32_10 = arith.constant 0 : i32
    %34 = arith.cmpi ne, %33, %c0_i32_10 : i32
    scf.if %34 {
      %c0_12 = arith.constant 0 : index
      %c0_13 = arith.constant 0 : index
      %37 = vector.load %arg5[%c0_12, %c0_13] : memref<8x128xf32, #tpu.memory_space<vmem>>, vector<8x128xf32>
      %38 = vector.shape_cast %25 : vector<16x128xf32> to vector<2x8x128xf32>
      %cst_14 = arith.constant dense<0.000000e+00> : vector<8x128xf32>
      %39 = vector.multi_reduction <add>, %38, %cst_14 [0] : vector<2x8x128xf32> to vector<8x128xf32>
      %40 = arith.addf %37, %39 : vector<8x128xf32>
      %c0_15 = arith.constant 0 : index
      %c0_16 = arith.constant 0 : index
      %41 = vector.load %arg5[%c0_15, %c0_16] : memref<8x128xf32, #tpu.memory_space<vmem>>, vector<8x128xf32>
      tpu.vector_store %arg5[%c0_15, %c0_16], %40 {strides = array<i32>} : memref<8x128xf32, #tpu.memory_space<vmem>>, vector<8x128xf32>,
    } else {
    }
    %35 = arith.extui %31 : i1 to i32
    %c0_i32_11 = arith.constant 0 : i32
    %36 = arith.cmpi ne, %35, %c0_i32_11 : i32
    scf.if %36 {
      %37 = tpu.iota {dimensions = array<i32: 0>} : vector<16x128xi32>
      %38 = tpu.iota {dimensions = array<i32: 1>} : vector<16x128xi32>
      %c128_i32 = arith.constant 128 : i32
      %39 = vector.broadcast %c128_i32 : i32 to vector<16x128xi32>
      %40 = arith.muli %37, %39 : vector<16x128xi32>
      %41 = vector.broadcast %29 : i32 to vector<16x128xi32>
      %42 = arith.addi %41, %40 : vector<16x128xi32>
      %43 = arith.addi %42, %38 : vector<16x128xi32>
      %44 = vector.broadcast %26 : i32 to vector<16x128xi32>
      %45 = arith.cmpi slt, %43, %44 : vector<16x128xi32>
      %cst_12 = arith.constant 0.000000e+00 : f32
      %46 = vector.broadcast %cst_12 : f32 to vector<16x128xf32>
      %47 = arith.select %45, %25, %46 : vector<16x128xi1>, vector<16x128xf32>
      %c0_13 = arith.constant 0 : index
      %c0_14 = arith.constant 0 : index
      %48 = vector.load %arg5[%c0_13, %c0_14] : memref<8x128xf32, #tpu.memory_space<vmem>>, vector<8x128xf32>
      %49 = vector.shape_cast %47 : vector<16x128xf32> to vector<2x8x128xf32>
      %cst_15 = arith.constant dense<0.000000e+00> : vector<8x128xf32>
      %50 = vector.multi_reduction <add>, %49, %cst_15 [0] : vector<2x8x128xf32> to vector<8x128xf32>
      %51 = arith.addf %48, %50 : vector<8x128xf32>
      %c0_16 = arith.constant 0 : index
      %c0_17 = arith.constant 0 : index
      %52 = vector.load %arg5[%c0_16, %c0_17] : memref<8x128xf32, #tpu.memory_space<vmem>>, vector<8x128xf32>
      tpu.vector_store %arg5[%c0_16, %c0_17], %51 {strides = array<i32>} : memref<8x128xf32, #tpu.memory_space<vmem>>, vector<8x128xf32>,
    } else {
    }
    return
  }
  func.func @transform_0(%arg0: i32, %arg1: i32, %arg2: memref<1xi32, #tpu.memory_space<smem>>) -> (i32, i32) {
    %c1_i32 = arith.constant 1 : i32
    %0 = arith.muli %arg0, %c1_i32 : i32
    %1 = arith.addi %0, %arg1 : i32
    %c0_i32 = arith.constant 0 : i32
    %2 = arith.minsi %1, %c0_i32 : i32
    %c0_i32_0 = arith.constant 0 : i32
    %c0_i32_1 = arith.constant 0 : i32
    return %2, %c0_i32_0 : i32, i32
  }
  func.func @transform_1(%arg0: i32, %arg1: i32, %arg2: memref<1xi32, #tpu.memory_space<smem>>) -> (i32, i32) {
    %c1_i32 = arith.constant 1 : i32
    %0 = arith.muli %arg0, %c1_i32 : i32
    %1 = arith.addi %0, %arg1 : i32
    %c0_i32 = arith.constant 0 : i32
    %2 = arith.minsi %1, %c0_i32 : i32
    %c0_i32_0 = arith.constant 0 : i32
    %c0_i32_1 = arith.constant 0 : i32
    return %2, %c0_i32_0 : i32, i32
  }
  func.func @transform_2(%arg0: i32, %arg1: i32, %arg2: memref<1xi32, #tpu.memory_space<smem>>) -> (i32, i32) {
    %c0_i32 = arith.constant 0 : i32
    %c0_i32_0 = arith.constant 0 : i32
    return %arg0, %c0_i32 : i32, i32
  }
}

</mosaic_0001>

<bundles_post_ra>
// kernel: tpu_custom_call.1
= control target key start
LH: loop header
LB: loop body
LE: loop exit
PB: predicated region body
PF: predicated region fallthrough
CT: control target
= control target key end

     0   :  { %s1017_s0 = inlined_call_operand.<no memory space> [shape: s32[1], index: 0, kind: input, shape index: {}]   ;;  %s1018_s1 = inlined_call_operand.hbm [shape: f32[16,128], index: 1, kind: input, shape index: {}]   ;;  %s1019_s2 = inlined_call_operand.hbm [shape: f32[16,128], index: 2, kind: input, shape index: {}]   ;;  %s1020_s3 = inlined_call_operand.hbm [shape: f32[16,128], index: 3, kind: output, shape index: {}]  }
   0x1   :  { %8 = sst [smem:[#allocation3]] %s1017_s0 }
   0x2   :  { %9 = vsyncpa [#allocation5], 0 }
   0x3   :  { %11 = vsyncpa [#allocation5 + $0x1], 0 }
   0x4   :  { %12 = vsyncpa [#allocation8], 0 }
   0x5   :  { %14 = vsyncpa [#allocation8 + $0x1], 0 }
   0x6   :  { %15 = vsyncpa [#allocation6], 0 }
   0x7   :  { %17 = vsyncpa [#allocation6 + $0x1], 0  ;;  %s790_s14 = smov 0   ;;  %s792_s15 = smov 0  }
   0x8   :  { %s794_s16 = smov 0   ;;  %s796_s17 = smov 0  }
   0x9   :  { %s798_s18 = smov 0   ;;  %s800_s19 = smov 0  }
   0xa   :  { %s802_s20 = smov 0   ;;  %s804_s0 = smov 0  }
   0xb LB: > { %s457_s21 = sadd.s32 4294967295, %s759_s0   ;;  %s458_s22 = sadd.s32 4294967294, %s759_s0   ;;  %s759_s0 = sphi %s804_s0, %s23_s0   ;;  %s755_s20 = sphi %s802_s20, %s1039_s20   ;;  %s751_s19 = sphi %s800_s19, %s1038_s19   ;;  %s747_s18 = sphi %s798_s18, %s1007_s18   ;;  %s743_s17 = sphi %s796_s17, %s1037_s17   ;;  %s739_s16 = sphi %s794_s16, %s1036_s16   ;;  %s735_s15 = sphi %s792_s15, %s1035_s15   ;;  %s731_s14 = sphi %s790_s14, %s1034_s14  }
   0xc   : > { %s35_s23 = sadd.s32 1, %s755_s20  ;;  %p728_p1 = scmp.ne.s32.totalorder %s747_s18, 0 }
   0xd   : > { %p37_p0 = scmp.ge.s32.totalorder %s35_s23, 2  ;;  %p56_p2 = scmp.eq.s32.totalorder %s759_s0, 0 }
   0xe   : > { %p61_p3 = scmp.ne.s32.totalorder %s747_s18, %s743_s17  ;;  %p62_p5 = scmp.eq.s32.totalorder %s457_s21, 0 }
   0xf   : > { %s1041_s23 = smov (%p37_p0, %s35_s23), 0  ;;  %p836_p4 = por %p728_p1, %p56_p2 }
  0x10   : > { %p840_p6 = por %p62_p5, %p61_p3  ;;  %s103_s26 = ssub.s32 %s755_s20, %s1041_s23 }
  0x11   : > { %p104_p7 = scmp.eq.s32.totalorder %s103_s26, 0  ;;  %s106_s27 = sadd.s32 1, %s739_s16 }
  0x12   : > { %s1024_s25 = scalar_select %p840_p6, 1, 0 }
  0x13   : > { %s848_s28 = scalar_select %p104_p7, %s739_s16, %s106_s27  }
  0x14   : > { %p116_p8 = scmp.ne.s32.totalorder %s739_s16, %s735_s15  ;;  %p117_p9 = scmp.eq.s32.totalorder %s457_s21, 1 }
  0x15   : > { %p122_p10 = scmp.ne.s32.totalorder %s735_s15, %s731_s14  ;;  %p123_p11 = scmp.eq.s32.totalorder %s458_s22, 1 }
  0x16   : > { %p854_p12 = por %p117_p9, %p116_p8  ;;  %p499_p1 = scmp.lt.s32.totalorder %s759_s0, 2 }
  0x17   : > { %p859_p0 = por %p123_p11, %p122_p10  ;;  %s761_s4 = smov [#allocation4]  }
  0x18   : > { %s1025_s29 = scalar_select %p854_p12, 1, 0 }
  0x19   : > { %s1026_s30 = scalar_select %p859_p0, 1, 0 }
  0x1a   : > { %s157_s5 = sshll.u32 %s761_s4, 4  ;;  %p866_p2 = pnand %p499_p1, %p836_p4  ;;  %s158_s5 = int_to_ptr.vmem [resolvable:$true] %s157_s5 }
  0x1b   : > { %s592_s9 = scalar_lea.hbm %s1018_s1, 256 }
  0x1c   : > { %p593_p3 = scmp.ne.s32.totalorder %s1018_s1, %s592_s9  ;;  %p594_p5 = pneg %p866_p2 }
  0x1d   : > { %p599_p8 = scmp.lt.u32.totalorder %s592_s9, %s592_s9  ;;  %p601_p9 = scmp.lt.u32.totalorder %s592_s9, %s1018_s1 }
  0x1e   : > { %p595_p7 = pnand %p594_p5, %p593_p3 }
  0x1f   : > { %p602_p10 = por %p601_p9, %p599_p8 }
  0x20   : > { %p596_p4 = pneg %p595_p7 }
  0x22   : > { %p603_p11 = pnand %p602_p10, %p596_p4 }
  0x24   : > { %606 = shalt.err (!%p603_p11)
}
  0x25   : > { %s607_s17 = scalar_lea.vmem %s158_s5, 256  ;;  %s614_s21 = scalar_lea.vmem %s158_s5, 512 }
  0x26   : > { %p608_p1 = scmp.ne.s32.totalorder %s158_s5, %s607_s17  ;;  %p615_p12 = scmp.lt.s32.totalorder %s158_s5, %s158_s5 }
  0x27   : > { %p616_p6 = scmp.lt.s32.totalorder %s614_s21, %s607_s17 }
  0x28   : > { %p610_p13 = pnand %p608_p1, %p594_p5 }
  0x29   : > { %p617_p3 = por %p616_p6, %p615_p12 }
  0x2a   : > { %p611_p0 = pneg %p610_p13 }
  0x2c   : > { %p618_p7 = pnand %p617_p3, %p611_p0 }
  0x2e   : > { %621 = shalt.err (!%p618_p7)
}
  0x2f   : > { %s762_s22 = smov 128   ;;  %s763_s24 = smov 8  }
  0x30   : > { %491 = dma.hbm_to_vmem [thread:$0]  (!%p866_p2), %s1018_s1, 256, %s158_s5, [#allocation5], %s762_s22, %s762_s22, %s763_s24  }
  0x31   : > { %p467_p13 = scmp.ge.s32.totalorder %s759_s0, 1  ;;  %p189_p4 = scmp.lt.s32.totalorder %s759_s0, 3 }
  0x32   : > { %s764_s7 = smov [#allocation7]   ;;  %s622_s11 = scalar_lea.hbm %s1019_s2, 256 }
  0x33   : > { %p897_p8 = pnand %p467_p13, %p189_p4  ;;  %s181_s8 = sshll.u32 %s764_s7, 4  ;;  %s182_s8 = int_to_ptr.vmem [resolvable:$true] %s181_s8 }
  0x34   : > { %p623_p6 = scmp.ne.s32.totalorder %s1019_s2, %s622_s11  ;;  %p629_p9 = scmp.lt.u32.totalorder %s622_s11, %s622_s11 }
  0x35   : > { %s1028_s4 = scalar_select %p897_p8, 1, 0 }
  0x36   : > { %p625_p12 = pnand %p623_p6, %p594_p5  ;;  %p631_p10 = scmp.lt.u32.totalorder %s622_s11, %s1019_s2 }
  0x38   : > { %p626_p0 = pneg %p625_p12  ;;  %p632_p11 = por %p631_p10, %p629_p9 }
  0x3a   : > { %p633_p1 = pnand %p632_p11, %p626_p0 }
  0x3c   : > { %636 = shalt.err (!%p633_p1)
}
  0x3d   : > { %s637_s21 = scalar_lea.vmem %s182_s8, 256  ;;  %s644_s26 = scalar_lea.vmem %s182_s8, 512 }
  0x3e   : > { %p638_p3 = scmp.ne.s32.totalorder %s182_s8, %s637_s21  ;;  %p645_p4 = scmp.lt.s32.totalorder %s182_s8, %s182_s8 }
  0x3f   : > { %p646_p8 = scmp.lt.s32.totalorder %s644_s26, %s637_s21 }
  0x40   : > { %p640_p7 = pnand %p638_p3, %p594_p5 }
  0x41   : > { %p647_p6 = por %p646_p8, %p645_p4 }
  0x42   : > { %p641_p13 = pneg %p640_p7 }
  0x44   : > { %p648_p12 = pnand %p647_p6, %p641_p13 }
  0x46   : > { %651 = shalt.err (!%p648_p12)
}
  0x47   : > { %494 = dma.hbm_to_vmem [thread:$0]  (!%p866_p2), %s1019_s2, 256, %s182_s8, [#allocation8], %s762_s22, %s762_s22, %s763_s24  }
  0x48   : > { %p1029_p0 = scmp.ne.s32.totalorder %s1028_s4, 0 }
  0x49   : > { %s195_s9 = sand.u32 (!%p1029_p0), 1, %s747_s18   ;;  %p1030_p5 = scmp.ne.s32.totalorder (!%p1029_p0), %s1024_s25, 0 }
  0x4a   : > { %193 = sbr.rel (%p1029_p0) target bundleno = 209 (0xd1), region = 28  ;;  %s468_s10 = sshll.u32 (!%p1029_p0), %s195_s9, 4 }
  0x4b   : > { %s196_s11 = scalar_lea.sflag (!%p1029_p0), [#allocation5], %s195_s9  ;;  %s199_s12 = scalar_lea.vmem (!%p1029_p0), [#allocation4], %s468_s10 }
  0x51   : > { %717 = dma.done.wait (%p1030_p5), %s196_s11, 256  }
  0x52   : > { %719 = vsyncadd (%p1030_p5), %s196_s11, 4294967040  ;;  %s205_s6 = scalar_lea.sflag [#allocation8], %s195_s9  ;;  %s931_s13 = scalar_lea.vmem [#allocation7], %s468_s10 }
  0x53   : > { %721 = dma.done.wait (%p1030_p5), %s205_s6, 256  }
  0x54   : > { %723 = vsyncadd (%p1030_p5), %s205_s6, 4294967040  ;;  %s231_s22 = sand.u32 1, %s735_s15   ;;  %s473_s24 = sshll.u32 %s751_s19, 11  ;;  %v765_v0 = vmov 0.0   ;;  %v247_v1 = vld [vmem:[%s199_s12] sm:$0xff]  ;;  %v248_v2 = vld [vmem:[%s199_s12 + $0x8] sm:$0xff] }
  0x55   : > { %s939_s4 = sld [smem:[#allocation3]]  ;;  %s470_s8 = sshll.u32 %s231_s22, 3  ;;  %v251_v3 = vand.u32 2147483647, %v247_v1  ;;  %v252_v4 = vand.u32 2147483647, %v248_v2 }
  0x56   : > { %s945_s5 = sadd.s32 2048, %s473_s24  ;;  %s947_s17 = scalar_lea.vmem [#allocation9], %s470_s8  ;;  %v259_v21 = vmax.f32 %v247_v1, 0.0  ;;  %v260_v24 = vmax.f32 %v248_v2, 0.0  ;;  %v249_v35 = vld [vmem:[%s931_s13] sm:$0xff]  ;;  %v250_v36 = vld [vmem:[%s931_s13 + $0x8] sm:$0xff] }
  0x57   : > { %246 = vst [vmem:[%s947_s17] sm:$0xff] %v765_v0  ;;  %v253_v5 = vsub.f32 0.0, %v251_v3  ;;  %v254_v6 = vsub.f32 0.0, %v252_v4  ;;  %v281_v47 = vmul.f32 %v249_v35, %v247_v1  ;;  %v282_v48 = vmul.f32 %v250_v36, %v248_v2 }
  0x59   : > { %v255_v7 = vmul.f32 1.442695, %v253_v5  ;;  %v257_v8 = vmul.f32 1.442695, %v254_v6 }
  0x5b   : > { %576 = vpow2.f32 %v255_v7  ;;  %p474_p2 = scmp.gt.s32.totalorder %s945_s5, %s939_s4 }
  0x5c   : > { %578 = vpow2.f32 %v257_v8 }
  0x5e   : > { %v314_v57 = vld [vmem:[%s947_s17] sm:$0xff] (!%p474_p2) }
  0x65   : > { %v577_v9 = vpop.eup %576 }
  0x66   : > { %v579_v10 = vpop.eup %578  ;;  %v261_v11 = vadd.f32 1.0, %v577_v9  ;;  %v264_v13 = vmul.f32 -0.5, %v577_v9  ;;  %v267_v16 = vand.u32 2147483647, %v577_v9 }
  0x67   : > { %v270_v12 = vadd.f32 1.0, %v579_v10  ;;  %v273_v14 = vmul.f32 -0.5, %v579_v10  ;;  %v276_v18 = vand.u32 2147483647, %v579_v10 }
  0x68   : > { %580 = vlog2.f32 %v261_v11  ;;  %v265_v15 = vadd.f32 1.0, %v264_v13  ;;  %vm268_vm0 = vcmp.lt.f32.partialorder %v267_v16, 0.0004427343 }
  0x69   : > { %582 = vlog2.f32 %v270_v12  ;;  %v274_v17 = vadd.f32 1.0, %v273_v14  ;;  %vm277_vm1 = vcmp.lt.f32.partialorder %v276_v18, 0.0004427343 }
  0x6a   : > { %v266_v19 = vmul.f32 %v577_v9, %v265_v15 }
  0x6b   : > { %v275_v22 = vmul.f32 %v579_v10, %v274_v17 }
  0x72   : > { %v581_v20 = vpop.eup %580 }
  0x73   : > { %v583_v23 = vpop.eup %582  ;;  %v263_v25 = vmul.f32 0.6931472, %v581_v20 }
  0x74   : > { %v272_v26 = vmul.f32 0.6931472, %v583_v23 }
  0x75   : > { %v269_v27 = vsel %vm268_vm0, %v266_v19, %v263_v25 }
  0x76   : > { %v278_v28 = vsel %vm277_vm1, %v275_v22, %v272_v26  ;;  %v279_v29 = vadd.f32 %v269_v27, %v259_v21 }
  0x77   : > { %v280_v30 = vadd.f32 %v278_v28, %v260_v24 }
  0x78   : > { %v285_v31 = vsub.f32 %v247_v1, %v279_v29  ;;  %v283_v49 = vsub.f32 %v279_v29, %v281_v47 }
  0x79   : > { %v286_v32 = vsub.f32 %v248_v2, %v280_v30  ;;  %v284_v51 = vsub.f32 %v280_v30, %v282_v48 }
  0x7a   : > { %v287_v33 = vmul.f32 1.442695, %v285_v31 }
  0x7b   : > { %v289_v34 = vmul.f32 1.442695, %v286_v32 }
  0x7c   : > { %584 = vpow2.f32 %v287_v33 }
  0x7d   : > { %586 = vpow2.f32 %v289_v34 }
  0x86   : > { %v585_v37 = vpop.eup %584 }
  0x87   : > { %v587_v38 = vpop.eup %586  ;;  %v291_v39 = vsub.f32 %v585_v37, %v249_v35 }
  0x88   : > { %v292_v40 = vsub.f32 %v587_v38, %v250_v36 }
  0x89   : > { %v293_v41 = vmul.f32 19.96008, %v291_v39 }
  0x8a   : > { %v294_v42 = vmul.f32 19.96008, %v292_v40 }
  0x8b   : > { %v471_v43 = vadd.f32 -19.96008, %v293_v41 }
  0x8c   : > { %v472_v44 = vadd.f32 -19.96008, %v294_v42 }
  0x8d   : > { %v297_v45 = vmul.f32 1.442695, %v471_v43 }
  0x8e   : > { %v299_v46 = vmul.f32 1.442695, %v472_v44 }
  0x8f   : > { %588 = vpow2.f32 %v297_v45 }
  0x90   : > { %590 = vpow2.f32 %v299_v46 }
  0x97   : > { %313 = sbr.rel (%p474_p2) target bundleno = 164 (0xa4), region = 44 }
  0x99   : > { %v589_v50 = vpop.eup %588 }
  0x9a   : > { %v591_v52 = vpop.eup %590  ;;  %v301_v53 = vsub.f32 1.0, %v589_v50 }
  0x9b   : > { %v302_v54 = vsub.f32 1.0, %v591_v52 }
  0x9c   : > { %v303_v55 = vmul.f32 %v301_v53, %v283_v49 }
  0x9d   : > { %v304_v56 = vmul.f32 %v302_v54, %v284_v51 }
  0x9f   : > { %v315_v58 = vadd.f32 %v304_v56, %v303_v55 }
  0xa1   : > { %v316_v59 = vadd.f32 %v315_v58, %v314_v57 }
  0xa3   : > { %317 = vst [vmem:[%s947_s17] sm:$0xff] %v316_v59 }
  0xa4 PF: > { %p475_p8 = scmp.le.s32.totalorder %s945_s5, %s939_s4 }
  0xa5   : > { %v321_v60 = vlaneseq (!%p475_p8)  ;;  %v328_v62 = vstv (!%p475_p8), %s473_s24  ;;  %v333_v4 = vstv (!%p475_p8), %s939_s4 }
  0xa6   : > { %320 = sbr.rel (%p475_p8) target bundleno = 184 (0xb8), region = 48 }
  0xa7   : > { %v322_v61 = vshrl.u32 (!%p475_p8), %v321_v60, 7  ;;  %v325_v0 = vand.u32 (!%p475_p8), 127, %v321_v60 }
  0xa9   : > { %v323_v63 = vadd.s32 (!%p475_p8), 8, %v322_v61  ;;  %v326_v1 = vmul.u32 (!%p475_p8), 128, %v322_v61 }
  0xaa   : > { %v338_v10 = vld [vmem:[%s947_s17] sm:$0xff] (!%p475_p8) }
  0xab   : > { %v327_v2 = vmul.u32 (!%p475_p8), 128, %v323_v63  ;;  %v329_v3 = vadd.s32 (!%p475_p8), %v328_v62, %v326_v1 }
  0xad   : > { %v330_v5 = vadd.s32 %v328_v62, %v327_v2  ;;  %v331_v6 = vadd.s32 %v329_v3, %v325_v0 }
  0xaf   : > { %v332_v7 = vadd.s32 %v330_v5, %v325_v0  ;;  %vm334_vm2 = vcmp.lt.s32.totalorder %v331_v6, %v333_v4 }
  0xb0   : > { %v336_v8 = vsel %vm334_vm2, %v303_v55, 0.0 }
  0xb1   : > { %vm335_vm3 = vcmp.lt.s32.totalorder %v332_v7, %v333_v4 }
  0xb2   : > { %v337_v9 = vsel %vm335_vm3, %v304_v56, 0.0 }
  0xb3   : > { %v339_v11 = vadd.f32 %v337_v9, %v336_v8 }
  0xb5   : > { %v340_v12 = vadd.f32 %v339_v11, %v338_v10 }
  0xb7   : > { %341 = vst [vmem:[%s947_s17] sm:$0xff] %v340_v12 }
  0xb8 PF: > { %s477_s25 = sshll.u32 %s751_s19, 7  ;;  %s356_s7 = sshll.u32 %s947_s17, 4  ;;  %s357_s7 = int_to_ptr.vmem [resolvable:$true] %s356_s7 }
  0xb9   : > { %s967_s27 = scalar_lea.hbm %s1020_s3, %s477_s25  ;;  %s343_s9 = scalar_lea.sflag [#allocation6], %s231_s22 }
  0xba   : > { %s652_s10 = scalar_lea.vmem %s357_s7, 128  ;;  %p1031_p10 = scmp.ne.s32.totalorder %s1025_s29, 0 }
  0xbb   : > { %p653_p9 = scmp.ne.s32.totalorder %s357_s7, %s652_s10  ;;  %s766_s11 = smov [#allocation9]  }
  0xbc   : > { %s656_s12 = sshll.u32 %s766_s11, 4  ;;  %s657_s12 = int_to_ptr.vmem [resolvable:$false] %s656_s12 }
  0xbd   : > { %p654_p11 = pnand %p653_p9, %p1031_p10  ;;  %s658_s6 = scalar_lea.vmem %s657_s12, 256 }
  0xbe   : > { %p659_p3 = scmp.lt.s32.totalorder %s357_s7, %s657_s12  ;;  %p660_p7 = scmp.lt.s32.totalorder %s658_s6, %s652_s10 }
  0xbf   : > { %p655_p1 = pneg %p654_p11 }
  0xc0   : > { %p661_p13 = por %p660_p7, %p659_p3 }
  0xc2   : > { %p662_p4 = pnand %p661_p13, %p655_p1 }
  0xc4   : > { %665 = shalt.err (!%p662_p4)
}
  0xc5   : > { %s666_s19 = scalar_lea.hbm %s967_s27, 128  ;;  %s670_s24 = scalar_lea.hbm %s1020_s3, 256 }
  0xc6   : > { %p667_p6 = scmp.ne.s32.totalorder %s967_s27, %s666_s19  ;;  %p671_p5 = scmp.lt.u32.totalorder %s967_s27, %s1020_s3 }
  0xc7   : > { %p672_p2 = scmp.lt.u32.totalorder %s670_s24, %s666_s19  ;;  %p674_p9 = scmp.lt.u32.totalorder %s666_s19, %s967_s27 }
  0xc8   : > { %p668_p12 = pnand %p667_p6, %p1031_p10 }
  0xc9   : > { %p673_p8 = por %p672_p2, %p671_p5 }
  0xca   : > { %p669_p0 = pneg %p668_p12 }
  0xcb   : > { %p675_p11 = por %p674_p9, %p673_p8 }
  0xcd   : > { %p676_p1 = pnand %p675_p11, %p669_p0 }
  0xcf   : > { %679 = shalt.err (!%p676_p1)
}
  0xd0   : > { %486 = dma.vmem_to_hbm [thread:$0]  (%p1031_p10), %s357_s7, 128, %s967_s27, %s343_s9  }
  0xd1 PF: > { %s368_s5 = sand.u32 1, %s731_s14   ;;  %p1032_p3 = scmp.ne.s32.totalorder %s1026_s30, 0 }
  0xd2   : > { %p1033_p7 = scmp.ge.s32.totalorder %s759_s0, 2  ;;  %s369_s17 = scalar_lea.sflag [#allocation6], %s368_s5 }
  0xd4   : > { %p496_p13 = pnand %p1033_p7, %p1032_p3 }
  0xd6   : > { %725 = dma.done.wait (!%p496_p13), %s369_s17, 128  }
  0xd7   : > { %727 = vsyncadd (!%p496_p13), %s369_s17, 4294967168  ;;  %s23_s0 = sadd.s32 1, %s759_s0   ;;  %s1034_s14 = smov %s735_s15 }
  0xd8   : > { %p20_p4 = scmp.ge.s32.totalorder %s23_s0, 4   ;;  %s1035_s15 = smov %s739_s16 }
  0xd9   : > { %s1036_s16 = smov %s848_s28  ;;  %s1037_s17 = smov %s747_s18 }
  0xda   : > { %s1007_s18 = smov 0   ;;  %s1038_s19 = smov %s755_s20 }
  0xdb   : > { %s1039_s20 = smov %s1041_s23  ;;  %22 = sbr.rel (!%p20_p4) target bundleno = 11 (0xb), region = 98 }
  0xe2   :  { %374 = vsyncpa [#allocation5], 1 }
  0xe3   :  { %376 = vsyncpa [#allocation5 + $0x1], 1 }
  0xe4   :  { %377 = vsyncpa [#allocation8], 1 }
  0xe5   :  { %379 = vsyncpa [#allocation8 + $0x1], 1 }
  0xe6   :  { %380 = vsyncpa [#allocation6], 1 }
  0xe7   :  { %382 = vsyncpa [#allocation6 + $0x1], 1 }

</bundles_post_ra>
